<compile_context>
chip_gen: v7x
topology: tpu7x:2x2x1
jax: 0.10.0
libtpu: 0.0.40
codegen_flags: <defaults>
</compile_context>

<pallas_src>
import functools
import math

import jax
import jax.numpy as jnp
from jax.experimental import pallas as pl
from jax.experimental.pallas import tpu as pltpu


def _round_up(v: int, m: int) -> int:
    return (v + m - 1) // m * m


def _vmem_capacity_bytes() -> int:
    """Per-TensorCore VMEM capacity; conservative fallback (v7x = 64 MiB)."""
    try:
        return int(pltpu.get_tpu_info().vmem_capacity_bytes)
    except Exception:
        return 64 * 1024 * 1024


# ----------------------------------------------------------------------------
# Path 1: fully VMEM-resident kernel (single grid point, loop inside).
# ----------------------------------------------------------------------------
def _antisym_resident_kernel(x_ref, a_ref, wcat_ref, bias_ref, o_ref, *,
                             num_iters: int, epsilon: float, f_pad: int,
                             unroll: bool):
    """x_ref (Np,Fp) f32, a_ref (Np,Np) bf16, wcat_ref (Fp,2Fp) bf16,
    bias_ref (1,Fp) f32, o_ref (Np,Fp) f32 (aliased onto x's buffer).

    Padded feature columns stay exactly zero; padded rows may drift by
    eps*tanh(bias) per step but never contaminate real rows (A's padded columns
    are zero) and are sliced away by the wrapper."""
    x0 = x_ref[...].astype(jnp.float32)
    a = a_ref[...]            # bf16 MXU operand
    w_cat = wcat_ref[...]     # bf16 MXU operand: [ Wphi^T | (W - W^T - g I)^T ]
    bias = bias_ref[...]      # (1, Fp): cheap sublane broadcast in the VPU add

    def body(_, x):
        xb = x.astype(jnp.bfloat16)
        xcat = jnp.dot(xb, w_cat, preferred_element_type=jnp.float32)  # (Np, 2Fp)
        xw = xcat[:, :f_pad]          # 128-aligned boundary -> free slice
        xasw = xcat[:, f_pad:]
        # Phi(X) = A_hat @ (X @ Wphi^T)   (GCNConv, bias=False)
        h_msg = jnp.dot(a, xw.astype(jnp.bfloat16),
                        preferred_element_type=jnp.float32)
        h = jnp.tanh(h_msg + xasw + bias)
        return x + epsilon * h        # Euler step

    x = jax.lax.fori_loop(0, num_iters, body, x0, unroll=unroll)
    o_ref[...] = x.astype(o_ref.dtype)


def _run_resident(x, a_hat, wphi_t, asw_t, b_p, *, num_iters, epsilon,
                  n, f, n_pad, f_pad, unroll, vmem_cap):
    x_p = jnp.zeros((n_pad, f_pad), jnp.float32).at[:n, :f].set(
        x.astype(jnp.float32))
    a_p = (jnp.zeros((n_pad, n_pad), jnp.float32)
           .at[:n, :n].set(a_hat.astype(jnp.float32))).astype(jnp.bfloat16)
    w_cat = (jnp.zeros((f_pad, 2 * f_pad), jnp.float32)
             .at[:f, :f].set(wphi_t)
             .at[:f, f_pad:f_pad + f].set(asw_t)).astype(jnp.bfloat16)

    kernel = functools.partial(_antisym_resident_kernel, num_iters=num_iters,
                               epsilon=epsilon, f_pad=f_pad, unroll=unroll)

    temps = 6 * n_pad * f_pad * 4 + 2 * n_pad * (2 * f_pad) * 4
    est_bytes = (n_pad * n_pad * 2 + f_pad * (2 * f_pad) * 2 + f_pad * 4
                 + (num_iters if unroll else 1) * temps)
    # Generation-aware cap: never request more than ~90% of physical VMEM.
    vmem_limit = int(min(int(0.9 * vmem_cap),
                         max(32 * 1024 * 1024, 2 * est_bytes)))

    cost = pl.CostEstimate(
        flops=num_iters * (2 * n_pad * n_pad * f_pad
                           + 2 * n_pad * f_pad * (2 * f_pad)),
        transcendentals=num_iters * n_pad * f_pad,
        bytes_accessed=(n_pad * n_pad * 2 + f_pad * (2 * f_pad) * 2
                        + 2 * n_pad * f_pad * 4 + f_pad * 4),
    )

    vmem = pl.BlockSpec(memory_space=pltpu.MemorySpace.VMEM)
    out_p = pl.pallas_call(
        kernel,
        out_shape=jax.ShapeDtypeStruct((n_pad, f_pad), jnp.float32),
        in_specs=[vmem, vmem, vmem, vmem],
        out_specs=vmem,
        input_output_aliases={0: 0},   # output reuses x_p's HBM buffer
        compiler_params=pltpu.CompilerParams(vmem_limit_bytes=vmem_limit),
        cost_estimate=cost,
    )(x_p, a_p, w_cat, b_p)

    return out_p[:n, :f].astype(x.dtype)


# ----------------------------------------------------------------------------
# Path 2: streamed / tiled kernel (one pallas_call per Euler iteration,
#         grid = (row blocks "parallel", K blocks "arbitrary"), A streamed).
# ----------------------------------------------------------------------------
def _antisym_streamed_kernel(xk_ref, xi_ref, a_ref, wphi_ref, asw_ref, bias_ref,
                             o_ref, acc_ref, *, epsilon: float):
    """Per grid point (i, k):
    xk_ref (bk,Fp) f32   rows k of X (matmul input for this K block)
    xi_ref (bm,Fp) f32   rows i of X (for the Euler update / x@asw^T)
    a_ref  (bm,bk) bf16  A_hat row/col block
    wphi_ref, asw_ref (Fp,Fp) bf16, bias_ref (1,Fp) f32
    o_ref  (bm,Fp) f32   output row block (resident across k)
    acc_ref (bm,Fp) f32  accumulator scratch
    """
    k = pl.program_id(1)

    @pl.when(k == 0)
    def _():
        acc_ref[...] = jnp.zeros_like(acc_ref)

    # Redundant per-row-block recompute of X[k] @ Wphi^T: hidden under the
    # HBM-bound A sweep (~F flops per byte of A traffic).
    xw_k = jnp.dot(xk_ref[...].astype(jnp.bfloat16), wphi_ref[...],
                   preferred_element_type=jnp.float32)
    acc_ref[...] += jnp.dot(a_ref[...], xw_k.astype(jnp.bfloat16),
                            preferred_element_type=jnp.float32)

    @pl.when(k == pl.num_programs(1) - 1)
    def _():
        xi = xi_ref[...]
        xasw = jnp.dot(xi.astype(jnp.bfloat16), asw_ref[...],
                       preferred_element_type=jnp.float32)
        h = jnp.tanh(acc_ref[...] + xasw + bias_ref[...])
        o_ref[...] = (xi + epsilon * h).astype(o_ref.dtype)


def _run_streamed(x, a_hat, wphi_t, asw_t, b_p, *, num_iters, epsilon,
                  n, f, f_pad, block_rows, vmem_cap):
    bm = bk = int(block_rows)
    n_pad = _round_up(max(n, bm), bm)
    num_i = n_pad // bm
    num_k = n_pad // bk

    # Pad / normalize ONCE per forward (outside the per-iteration hot path).
    x_p = jnp.zeros((n_pad, f_pad), jnp.float32).at[:n, :f].set(
        x.astype(jnp.float32))
    a_p = (jnp.zeros((n_pad, n_pad), jnp.float32)
           .at[:n, :n].set(a_hat.astype(jnp.float32))).astype(jnp.bfloat16)
    wphi_p = (jnp.zeros((f_pad, f_pad), jnp.float32)
              .at[:f, :f].set(wphi_t)).astype(jnp.bfloat16)
    asw_p = (jnp.zeros((f_pad, f_pad), jnp.float32)
             .at[:f, :f].set(asw_t)).astype(jnp.bfloat16)

    kernel = functools.partial(_antisym_streamed_kernel, epsilon=epsilon)

    block_bytes = (2 * bm * bk * 2            # A block, double buffered
                   + 2 * bk * f_pad * 4       # x K-view
                   + 2 * bm * f_pad * 4       # x row-view
                   + 2 * 2 * f_pad * f_pad * 2  # both weights
                   + f_pad * 4                # bias
                   + 2 * bm * f_pad * 4       # output block
                   + bm * f_pad * 4)          # accumulator scratch
    vmem_limit = int(min(int(0.9 * vmem_cap),
                         max(32 * 1024 * 1024, 3 * block_bytes)))

    cost = pl.CostEstimate(
        flops=(2 * n_pad * n_pad * f_pad                 # A sweep
               + num_i * 2 * n_pad * f_pad * f_pad       # redundant X@Wphi^T
               + 2 * n_pad * f_pad * f_pad),             # X@(W-W^T-gI)^T
        transcendentals=n_pad * f_pad,
        bytes_accessed=(n_pad * n_pad * 2
                        + (num_i + 2) * n_pad * f_pad * 4
                        + 2 * 2 * f_pad * f_pad),
    )

    grid_spec = pltpu.PrefetchScalarGridSpec(
        num_scalar_prefetch=0,
        grid=(num_i, num_k),
        in_specs=[
            pl.BlockSpec((bk, f_pad), lambda i, k: (k, 0)),     # X (K view)
            pl.BlockSpec((bm, f_pad), lambda i, k: (i, 0)),     # X (row view)
            pl.BlockSpec((bm, bk), lambda i, k: (i, k)),        # A_hat block
            pl.BlockSpec((f_pad, f_pad), lambda i, k: (0, 0)),  # Wphi^T
            pl.BlockSpec((f_pad, f_pad), lambda i, k: (0, 0)),  # (W-W^T-gI)^T
            pl.BlockSpec((1, f_pad), lambda i, k: (0, 0)),      # bias
        ],
        out_specs=pl.BlockSpec((bm, f_pad), lambda i, k: (i, 0)),
        scratch_shapes=[pltpu.VMEM((bm, f_pad), jnp.float32)],
    )

    step = pl.pallas_call(
        kernel,
        out_shape=jax.ShapeDtypeStruct((n_pad, f_pad), jnp.float32),
        grid_spec=grid_spec,
        compiler_params=pltpu.CompilerParams(
            dimension_semantics=("parallel", "arbitrary"),
            vmem_limit_bytes=vmem_limit),
        cost_estimate=cost,
    )

    # One pallas_call per Euler iteration (per-iteration re-sync of X across
    # row blocks / TensorCores). No output aliasing here: row-block i's write
    # would race with later K-block reads of the same buffer.
    for _ in range(num_iters):
        x_p = step(x_p, x_p, a_p, wphi_p, asw_p, b_p)

    return x_p[:n, :f].astype(x.dtype)


# ----------------------------------------------------------------------------
# Public wrapper.
# ----------------------------------------------------------------------------
def anti_symmetric_conv(x, a_hat, w, w_phi, bias, *,
                        num_iters: int = 1, epsilon: float = 0.1,
                        gamma: float = 0.1, block_rows: int = 256,
                        force_streamed: bool = False):
    """x: (N, F); a_hat: (N, N) GCN-normalized dense adjacency;
    w, w_phi: (F, F); bias: (F,)."""
    n, f = x.shape
    f_pad = _round_up(f, 128)
    vmem_cap = _vmem_capacity_bytes()
    budget = int(0.80 * vmem_cap)

    eye = jnp.eye(f, dtype=jnp.float32)
    # antisymmetric_W = W - W^T - gamma*I ; torch forward uses x @ (...)^T
    asw_t = (w - w.T - gamma * eye).T
    wphi_t = w_phi.T                      # torch Linear: lin(x) = x @ weight^T
    b_p = jnp.zeros((1, f_pad), jnp.float32).at[0, :f].set(
        bias.astype(jnp.float32))

    # Resident-path footprint estimate (N padded to 128: lane/K axis of A and
    # bf16 sublane packing both want 128-multiples).
    n_pad = _round_up(n, 128)
    unroll = num_iters <= 4               # gate unrolling: avoid temp blow-up
    temps = 6 * n_pad * f_pad * 4 + 2 * n_pad * (2 * f_pad) * 4
    resident_bytes = (n_pad * n_pad * 2 + f_pad * (2 * f_pad) * 2 + f_pad * 4
                      + (num_iters if unroll else 1) * temps)

    if (not force_streamed) and resident_bytes <= budget:
        return _run_resident(x, a_hat, wphi_t, asw_t, b_p,
                             num_iters=num_iters, epsilon=epsilon,
                             n=n, f=f, n_pad=n_pad, f_pad=f_pad,
                             unroll=unroll, vmem_cap=vmem_cap)
    return _run_streamed(x, a_hat, wphi_t, asw_t, b_p,
                         num_iters=num_iters, epsilon=epsilon,
                         n=n, f=f, f_pad=f_pad, block_rows=block_rows,
                         vmem_cap=vmem_cap)


# ----------------------------------------------------------------------------
# Helpers: dense GCN-normalized adjacency + pure-JAX reference.
# ----------------------------------------------------------------------------
def build_gcn_norm_adj(edge_index, num_nodes):
    """Dense D^-1/2 (A + I) D^-1/2 with messages src -> dst."""
    src, dst = edge_index
    a = jnp.zeros((num_nodes, num_nodes), dtype=jnp.float32)
    a = a.at[dst, src].add(1.0)
    a = a + jnp.eye(num_nodes, dtype=jnp.float32)
    deg = a.sum(axis=1)
    dinv = jnp.where(deg > 0, jax.lax.rsqrt(deg), 0.0)
    return dinv[:, None] * a * dinv[None, :]


def reference_forward(x, a_hat, w, w_phi, bias, *, num_iters, epsilon, gamma):
    f = x.shape[1]
    asw = w - w.T - gamma * jnp.eye(f, dtype=x.dtype)
    for _ in range(num_iters):
        h = a_hat @ (x @ w_phi.T)
        h = x @ asw.T + h
        h = h + bias
        h = jnp.tanh(h)
        x = x + epsilon * h
    return x


if __name__ == "__main__":
    key = jax.random.PRNGKey(0)
    EPSILON, GAMMA = 0.1, 0.1

    # ---- Test 1: tiny graph (resident path; matches the module's demo regime).
    N, F, NUM_ITERS = 8, 32, 2
    k_x, k_w, k_phi, k_x2, k_e2 = jax.random.split(key, 5)

    x = jax.random.normal(k_x, (N, F), dtype=jnp.float32)
    src = jnp.array(list(range(N)) + [0, 2, 5], dtype=jnp.int32)
    dst = jnp.array([(i + 1) % N for i in range(N)] + [4, 6, 1], dtype=jnp.int32)
    a_hat = build_gcn_norm_adj(jnp.stack([src, dst], axis=0), N)

    bound_w = 1.0 / math.sqrt(F)
    W = jax.random.uniform(k_w, (F, F), jnp.float32, -bound_w, bound_w)
    bound_phi = math.sqrt(6.0 / (F + F))
    W_phi = jax.random.uniform(k_phi, (F, F), jnp.float32, -bound_phi, bound_phi)
    bias = jnp.zeros((F,), dtype=jnp.float32)   # zeros() init in the module

    out = anti_symmetric_conv(x, a_hat, W, W_phi, bias,
                              num_iters=NUM_ITERS, epsilon=EPSILON, gamma=GAMMA)
    out = jax.block_until_ready(out)
    ref = reference_forward(x, a_hat, W, W_phi, bias,
                            num_iters=NUM_ITERS, epsilon=EPSILON, gamma=GAMMA)
    assert out.shape == (N, F)
    assert jnp.allclose(out, ref, atol=2e-2, rtol=2e-2), \
        "resident-path kernel mismatch vs reference"

    # ---- Test 2: larger graph, force the streamed/tiled parallel-grid path.
    N2, F2, NUM_ITERS2 = 300, 32, 3
    x2 = jax.random.normal(k_x2, (N2, F2), dtype=jnp.float32)
    e_src = jax.random.randint(k_e2, (4 * N2,), 0, N2, dtype=jnp.int32)
    e_dst = jax.random.randint(jax.random.fold_in(k_e2, 1), (4 * N2,), 0, N2,
                               dtype=jnp.int32)
    a_hat2 = build_gcn_norm_adj(jnp.stack([e_src, e_dst], axis=0), N2)

    bound_w2 = 1.0 / math.sqrt(F2)
    W2 = jax.random.uniform(jax.random.fold_in(k_w, 1), (F2, F2), jnp.float32,
                            -bound_w2, bound_w2)
    bound_phi2 = math.sqrt(6.0 / (F2 + F2))
    W_phi2 = jax.random.uniform(jax.random.fold_in(k_phi, 1), (F2, F2),
                                jnp.float32, -bound_phi2, bound_phi2)
    bias2 = jax.random.uniform(jax.random.fold_in(k_x, 1), (F2,), jnp.float32,
                               -0.1, 0.1)      # nonzero bias for coverage

    out2 = anti_symmetric_conv(x2, a_hat2, W2, W_phi2, bias2,
                               num_iters=NUM_ITERS2, epsilon=EPSILON,
                               gamma=GAMMA, block_rows=128,
                               force_streamed=True)
    out2 = jax.block_until_ready(out2)
    ref2 = reference_forward(x2, a_hat2, W2, W_phi2, bias2,
                             num_iters=NUM_ITERS2, epsilon=EPSILON, gamma=GAMMA)
    assert out2.shape == (N2, F2)
    assert jnp.allclose(out2, ref2, atol=2e-2, rtol=2e-2), \
        "streamed-path kernel mismatch vs reference"

    print("KERNEL_OK")
</pallas_src>

<mosaic_0001>
module attributes {stable_mosaic.version = 11 : i64} {
  func.func @_antisym_resident_kernel(%arg0: memref<128x128xf32, #tpu.memory_space<vmem>>, %arg1: memref<128x128xbf16, #tpu.memory_space<vmem>>, %arg2: memref<128x256xbf16, #tpu.memory_space<vmem>>, %arg3: memref<1x128xf32, #tpu.memory_space<vmem>>, %arg4: memref<128x128xf32, #tpu.memory_space<vmem>>) attributes {dimension_semantics = [], scalar_prefetch = 0 : i64, scratch_operands = 0 : i64, tpu.core_type = #tpu.core_type<tc>} {
    %c0 = arith.constant 0 : index
    %c0_0 = arith.constant 0 : index
    %0 = vector.load %arg0[%c0, %c0_0] : memref<128x128xf32, #tpu.memory_space<vmem>>, vector<128x128xf32>
    %c0_1 = arith.constant 0 : index
    %c0_2 = arith.constant 0 : index
    %1 = vector.load %arg1[%c0_1, %c0_2] : memref<128x128xbf16, #tpu.memory_space<vmem>>, vector<128x128xbf16>
    %c0_3 = arith.constant 0 : index
    %c0_4 = arith.constant 0 : index
    %2 = vector.load %arg2[%c0_3, %c0_4] : memref<128x256xbf16, #tpu.memory_space<vmem>>, vector<128x256xbf16>
    %c0_5 = arith.constant 0 : index
    %c0_6 = arith.constant 0 : index
    %3 = vector.load %arg3[%c0_5, %c0_6] : memref<1x128xf32, #tpu.memory_space<vmem>>, vector<1x128xf32>
    %c0_i32 = arith.constant 0 : i32
    %4 = arith.truncf %0 : vector<128x128xf32> to vector<128x128xbf16>
    %cst = arith.constant dense<0.000000e+00> : vector<128x256xf32>
    %5 = tpu.matmul %4, %2, %cst {dimension_numbers = #tpu.dot_dimension_numbers<[1], [0], [0], [1], [0, 0, 1, 1], [], []>} : vector<128x128xbf16>, vector<128x256xbf16>, vector<128x256xf32> -> vector<128x256xf32>
    %6 = vector.extract_strided_slice %5 {offsets = [0, 0], sizes = [128, 128], strides = [1, 1]} : vector<128x256xf32> to vector<128x128xf32>
    %7 = vector.extract_strided_slice %5 {offsets = [0, 128], sizes = [128, 128], strides = [1, 1]} : vector<128x256xf32> to vector<128x128xf32>
    %8 = arith.truncf %6 : vector<128x128xf32> to vector<128x128xbf16>
    %cst_7 = arith.constant dense<0.000000e+00> : vector<128x128xf32>
    %9 = tpu.matmul %1, %8, %cst_7 {dimension_numbers = #tpu.dot_dimension_numbers<[1], [0], [0], [1], [0, 0, 1, 1], [], []>} : vector<128x128xbf16>, vector<128x128xbf16>, vector<128x128xf32> -> vector<128x128xf32>
    %10 = arith.addf %9, %7 : vector<128x128xf32>
    %11 = vector.broadcast %3 : vector<1x128xf32> to vector<128x128xf32>
    %12 = arith.addf %10, %11 : vector<128x128xf32>
    %13 = math.tanh %12 : vector<128x128xf32>
    %cst_8 = arith.constant 1.000000e-01 : f32
    %14 = vector.broadcast %cst_8 : f32 to vector<128x128xf32>
    %15 = arith.mulf %14, %13 : vector<128x128xf32>
    %16 = arith.addf %0, %15 : vector<128x128xf32>
    %c1_i32 = arith.constant 1 : i32
    %17 = arith.truncf %16 : vector<128x128xf32> to vector<128x128xbf16>
    %cst_9 = arith.constant dense<0.000000e+00> : vector<128x256xf32>
    %18 = tpu.matmul %17, %2, %cst_9 {dimension_numbers = #tpu.dot_dimension_numbers<[1], [0], [0], [1], [0, 0, 1, 1], [], []>} : vector<128x128xbf16>, vector<128x256xbf16>, vector<128x256xf32> -> vector<128x256xf32>
    %19 = vector.extract_strided_slice %18 {offsets = [0, 0], sizes = [128, 128], strides = [1, 1]} : vector<128x256xf32> to vector<128x128xf32>
    %20 = vector.extract_strided_slice %18 {offsets = [0, 128], sizes = [128, 128], strides = [1, 1]} : vector<128x256xf32> to vector<128x128xf32>
    %21 = arith.truncf %19 : vector<128x128xf32> to vector<128x128xbf16>
    %cst_10 = arith.constant dense<0.000000e+00> : vector<128x128xf32>
    %22 = tpu.matmul %1, %21, %cst_10 {dimension_numbers = #tpu.dot_dimension_numbers<[1], [0], [0], [1], [0, 0, 1, 1], [], []>} : vector<128x128xbf16>, vector<128x128xbf16>, vector<128x128xf32> -> vector<128x128xf32>
    %23 = arith.addf %22, %20 : vector<128x128xf32>
    %24 = vector.broadcast %3 : vector<1x128xf32> to vector<128x128xf32>
    %25 = arith.addf %23, %24 : vector<128x128xf32>
    %26 = math.tanh %25 : vector<128x128xf32>
    %cst_11 = arith.constant 1.000000e-01 : f32
    %27 = vector.broadcast %cst_11 : f32 to vector<128x128xf32>
    %28 = arith.mulf %27, %26 : vector<128x128xf32>
    %29 = arith.addf %16, %28 : vector<128x128xf32>
    %c0_12 = arith.constant 0 : index
    %c0_13 = arith.constant 0 : index
    %30 = vector.load %arg4[%c0_12, %c0_13] : memref<128x128xf32, #tpu.memory_space<vmem>>, vector<128x128xf32>
    tpu.vector_store %arg4[%c0_12, %c0_13], %29 {strides = array<i32>} : memref<128x128xf32, #tpu.memory_space<vmem>>, vector<128x128xf32>,
    return
  }
}

</mosaic_0001>

<bundles_post_ra>
// kernel: tpu_custom_call.1
= control target key start
LH: loop header
LB: loop body
LE: loop exit
PB: predicated region body
PF: predicated region fallthrough
CT: control target
= control target key end

     0   :  { %9 = vsyncpa [#allocation3], 0  ;;  %s1588_s0 = inlined_call_operand.hbm [shape: f32[128,128], index: 0, kind: input, shape index: {}, may-alias: {0,4}]   ;;  %s1589_s1 = inlined_call_operand.vmem [shape: bf16[128,128], index: 1, kind: input, shape index: {}]   ;;  %s1590_s2 = inlined_call_operand.vmem [shape: bf16[128,256], index: 2, kind: input, shape index: {}]   ;;  %s1591_s3 = inlined_call_operand.vmem [shape: f32[1,128], index: 3, kind: input, shape index: {}]   ;;  %s1592_s4 = inlined_call_operand.hbm [shape: f32[128,128], index: 4, kind: output, shape index: {}, may-alias: {0,4}]  }
   0x1   :  { %10 = vsyncpa [#allocation4], 0  ;;  %s1099_s15 = smov [#allocation2]   ;;  %s1051_s19 = scalar_lea.hbm %s1588_s0, 2048 }
   0x2   :  { %s16_s16 = sshll.u32 %s1099_s15, 4  ;;  %p1052_p0 = scmp.ne.s32.totalorder %s1588_s0, %s1051_s19  ;;  %s17_s16 = int_to_ptr.vmem [resolvable:$true] %s16_s16 }
   0x3   :  { %p1055_p1 = scmp.lt.u32.totalorder %s1051_s19, %s1588_s0 }
   0x5   :  { %p1057_p2 = pnand %p1055_p1, %p1052_p0 }
   0x7   :  { %1060 = shalt.err (!%p1057_p2)
}
   0x8   :  { %s1061_s24 = scalar_lea.vmem %s17_s16, 2048  ;;  %p1066_p4 = scmp.lt.s32.totalorder %s17_s16, %s17_s16 }
   0x9   :  { %p1062_p3 = scmp.ne.s32.totalorder %s17_s16, %s1061_s24  ;;  %p1067_p5 = scmp.lt.s32.totalorder %s1061_s24, %s1061_s24 }
   0xb   :  { %p1068_p6 = por %p1067_p5, %p1066_p4 }
   0xd   :  { %p1069_p7 = pnand %p1068_p6, %p1062_p3 }
   0xf   :  { %1072 = shalt.err (!%p1069_p7)
}
  0x10   :  { %s1100_s25 = smov 128   ;;  %s1101_s26 = smov 8  }
  0x11   :  { %22 = dma.hbm_to_vmem [thread:$0]  %s1588_s0, 2048, %s17_s16, [#allocation3], %s1100_s25, %s1100_s25, %s1101_s26  }
  0x12   :  { %1095 = dma.done.wait [#allocation3], 2048  }
  0x13   :  { %1096 = vsyncadd [#allocation3], 4294965248  ;;  %v1102_v0 = vmov 0   ;;  %v1148_v1 = vld [vmem:[%s1590_s2 + $0x4] ss:$8 sps:$4 sm:$0xff]   ;;  %v1248_v20 = vld [vmem:[#allocation2 + $0x10] sm:$0xff] }
  0x14   :  { %202 = vmatprep.mubr.bf16.mxu0 %v1102_v0  ;;  %v1153_v2 = vld [vmem:[%s1590_s2] ss:$8 sps:$4 sm:$0xff]   ;;  %170 = vmatprep.subr.bf16.mxu0 %v1148_v1  ;;  %v1159_v3 = vld [vmem:[%s1590_s2 + $0x14] ss:$8 sps:$4 sm:$0xff]   ;;  %v1165_v4 = vld [vmem:[%s1590_s2 + $0x10] ss:$8 sps:$4 sm:$0xff]  }
  0x15   :  { %171 = vmatpush1.bf16.msra.mxu0 %v1153_v2  ;;  %v1171_v5 = vld [vmem:[%s1590_s2 + $0x24] ss:$8 sps:$4 sm:$0xff]   ;;  %v1177_v6 = vld [vmem:[%s1590_s2 + $0x20] ss:$8 sps:$4 sm:$0xff]   ;;  %v1183_v7 = vld [vmem:[%s1590_s2 + $0x34] ss:$8 sps:$4 sm:$0xff]  }
  0x16   :  { %172 = vmatprep.subr.bf16.mxu0 %v1159_v3  ;;  %v1189_v8 = vld [vmem:[%s1590_s2 + $0x30] ss:$8 sps:$4 sm:$0xff]   ;;  %v1195_v9 = vld [vmem:[%s1590_s2 + $0x44] ss:$8 sps:$4 sm:$0xff]   ;;  %v1201_v10 = vld [vmem:[%s1590_s2 + $0x40] ss:$8 sps:$4 sm:$0xff]  }
  0x17   :  { %v1206_v11 = vld [vmem:[%s1590_s2 + $0x54] ss:$8 sps:$4 sm:$0xff]   ;;  %v1212_v12 = vld [vmem:[%s1590_s2 + $0x50] ss:$8 sps:$4 sm:$0xff]   ;;  %v1217_v13 = vld [vmem:[%s1590_s2 + $0x64] ss:$8 sps:$4 sm:$0xff]  }
  0x18   :  { %v1225_v14 = vld [vmem:[%s1590_s2 + $0x60] ss:$8 sps:$4 sm:$0xff]   ;;  %v1231_v15 = vld [vmem:[%s1590_s2 + $0x74] ss:$8 sps:$4 sm:$0xff]   ;;  %v1237_v16 = vld [vmem:[%s1590_s2 + $0x70] ss:$8 sps:$4 sm:$0xff]  }
  0x19   :  { %173 = vmatpush1.bf16.msra.mxu0 %v1165_v4  ;;  %v1239_v17 = vld [vmem:[#allocation2] sm:$0xff]  ;;  %v1241_v18 = vld [vmem:[#allocation2 + $0x8] sm:$0xff]  ;;  %v1250_v21 = vld [vmem:[#allocation2 + $0x18] sm:$0xff] }
  0x1a   :  { %174 = vmatprep.subr.bf16.mxu0 %v1171_v5  ;;  %v82_v19 = vpack.c.bf16 %v1241_v18, %v1239_v17  ;;  %v83_v22 = vpack.c.bf16 %v1250_v21, %v1248_v20  ;;  %v1255_v23 = vld [vmem:[#allocation2 + $0x20] sm:$0xff]  ;;  %v1257_v24 = vld [vmem:[#allocation2 + $0x28] sm:$0xff]  ;;  %v1262_v26 = vld [vmem:[#allocation2 + $0x30] sm:$0xff] }
  0x1b   :  { %v84_v25 = vpack.c.bf16 %v1257_v24, %v1255_v23  ;;  %v1264_v27 = vld [vmem:[#allocation2 + $0x38] sm:$0xff]  ;;  %v1269_v29 = vld [vmem:[#allocation2 + $0x40] sm:$0xff]  ;;  %v1271_v30 = vld [vmem:[#allocation2 + $0x48] sm:$0xff] }
  0x1c   :  { %v85_v28 = vpack.c.bf16 %v1264_v27, %v1262_v26  ;;  %v86_v31 = vpack.c.bf16 %v1271_v30, %v1269_v29  ;;  %v1276_v32 = vld [vmem:[#allocation2 + $0x50] sm:$0xff]  ;;  %v1278_v33 = vld [vmem:[#allocation2 + $0x58] sm:$0xff]  ;;  %v1283_v35 = vld [vmem:[#allocation2 + $0x60] sm:$0xff] }
  0x1d   :  { %175 = vmatpush1.bf16.msra.mxu0 %v1177_v6  ;;  %v87_v34 = vpack.c.bf16 %v1278_v33, %v1276_v32  ;;  %v1285_v36 = vld [vmem:[#allocation2 + $0x68] sm:$0xff]  ;;  %v1290_v38 = vld [vmem:[#allocation2 + $0x70] sm:$0xff]  ;;  %v1292_v39 = vld [vmem:[#allocation2 + $0x78] sm:$0xff] }
  0x1e   :  { %176 = vmatprep.subr.bf16.mxu0 %v1183_v7  ;;  %v88_v37 = vpack.c.bf16 %v1285_v36, %v1283_v35  ;;  %v89_v40 = vpack.c.bf16 %v1292_v39, %v1290_v38  ;;  %v979_v41 = vld [vmem:[%s1589_s1] sm:$0xff]  }
  0x1f   :  { %902 = vmatprep.mubr.bf16.mxu1 %v979_v41 }
  0x21   :  { %177 = vmatpush1.bf16.msra.mxu0 %v1189_v8 }
  0x22   :  { %178 = vmatprep.subr.bf16.mxu0 %v1195_v9 }
  0x25   :  { %179 = vmatpush1.bf16.msra.mxu0 %v1201_v10 }
  0x26   :  { %180 = vmatprep.subr.bf16.mxu0 %v1206_v11 }
  0x29   :  { %181 = vmatpush1.bf16.msra.mxu0 %v1212_v12 }
  0x2a   :  { %182 = vmatprep.subr.bf16.mxu0 %v1217_v13 }
  0x2d   :  { %183 = vmatpush1.bf16.msra.mxu0 %v1225_v14 }
  0x2e   :  { %184 = vmatprep.subr.bf16.mxu0 %v1231_v15 }
  0x31   :  { %185 = vmatpush1.bf16.msra.mxu0 %v1237_v16 }
  0x34   :  { %203 = vmatmul.mubr.bf16.vlgmr.msra.gmra.mrb[0].mxu0 %v82_v19 }
  0x35   :  { %212 = vmatprep.mubr.bf16.mxu0 %v1102_v0 }
  0x3c   :  { %213 = vmatmul.mubr.bf16.gmra.mrb[4].mxu0 %v83_v22 }
  0x3d   :  { %222 = vmatprep.mubr.bf16.mxu0 %v1102_v0 }
  0x44   :  { %223 = vmatmul.mubr.bf16.gmra.mrb[8].mxu0 %v84_v25 }
  0x45   :  { %232 = vmatprep.mubr.bf16.mxu0 %v1102_v0 }
  0x4c   :  { %233 = vmatmul.mubr.bf16.gmra.mrb[12].mxu0 %v85_v28 }
  0x4d   :  { %242 = vmatprep.mubr.bf16.mxu0 %v1102_v0 }
  0x54   :  { %243 = vmatmul.mubr.bf16.gmra.mrb[16].mxu0 %v86_v31 }
  0x55   :  { %252 = vmatprep.mubr.bf16.mxu0 %v1102_v0 }
  0x5c   :  { %253 = vmatmul.mubr.bf16.gmra.mrb[20].mxu0 %v87_v34 }
  0x5d   :  { %262 = vmatprep.mubr.bf16.mxu0 %v1102_v0 }
  0x64   :  { %263 = vmatmul.mubr.bf16.gmra.mrb[24].mxu0 %v88_v37 }
  0x65   :  { %272 = vmatprep.mubr.bf16.mxu0 %v1102_v0 }
  0x6c   :  { %273 = vmatmul.mubr.bf16.gmra.mrb[28].mxu0 %v89_v40 }
  0x6d   :  { %934 = vmatprep.mubr.bf16.mxu0 %v979_v41 }
 0x107   :  { %v204_v42 = vpop.f32.mrb[0].mxu0 }
 0x108   :  { %v1299_v43 = vpop.f32.mrb[1].mxu0 }
 0x109   :  { %v208_v44 = vpop.f32.mrb[2].mxu0 }
 0x10a   :  { %v283_v45 = vpack.c.bf16 %v208_v44, %v204_v42  ;;  %v1301_v46 = vpop.f32.mrb[3].mxu0 }
 0x10c   :  { %886 = vmatprep.subr.bf16.mxu1 %v283_v45 }
 0x10d   :  { %887 = vmatpush3.bf16.msra.mxu1 %v283_v45 }
 0x10f   :  { %v214_v47 = vpop.f32.mrb[4].mxu0 }
 0x110   :  { %v1303_v48 = vpop.f32.mrb[5].mxu0 }
 0x111   :  { %v218_v49 = vpop.f32.mrb[6].mxu0 }
 0x112   :  { %v284_v50 = vpack.c.bf16 %v218_v49, %v214_v47  ;;  %v1305_v51 = vpop.f32.mrb[7].mxu0 }
 0x114   :  { %888 = vmatprep.subr.bf16.mxu1 %v284_v50 }
 0x115   :  { %889 = vmatpush3.bf16.msra.mxu1 %v284_v50 }
 0x117   :  { %v224_v52 = vpop.f32.mrb[8].mxu0 }
 0x118   :  { %v1307_v53 = vpop.f32.mrb[9].mxu0 }
 0x119   :  { %v228_v54 = vpop.f32.mrb[10].mxu0 }
 0x11a   :  { %v285_v55 = vpack.c.bf16 %v228_v54, %v224_v52  ;;  %v1309_v56 = vpop.f32.mrb[11].mxu0 }
 0x11c   :  { %890 = vmatprep.subr.bf16.mxu1 %v285_v55 }
 0x11d   :  { %891 = vmatpush3.bf16.msra.mxu1 %v285_v55 }
 0x11f   :  { %v234_v57 = vpop.f32.mrb[12].mxu0 }
 0x120   :  { %v1311_v58 = vpop.f32.mrb[13].mxu0 }
 0x121   :  { %v238_v59 = vpop.f32.mrb[14].mxu0 }
 0x122   :  { %v286_v60 = vpack.c.bf16 %v238_v59, %v234_v57  ;;  %v1313_v61 = vpop.f32.mrb[15].mxu0  ;;  %v1334_v57 = vld [vmem:[%s1589_s1 + $0x8] sm:$0xff]   ;;  %v1339_v59 = vld [vmem:[%s1589_s1 + $0x10] sm:$0xff]  }
 0x124   :  { %892 = vmatprep.subr.bf16.mxu1 %v286_v60 }
 0x125   :  { %893 = vmatpush3.bf16.msra.mxu1 %v286_v60  ;;  %v1349_v60 = vld [vmem:[%s1589_s1 + $0x18] sm:$0xff]  }
 0x127   :  { %v244_v62 = vpop.f32.mrb[16].mxu0 }
 0x128   :  { %v1315_v63 = vpop.f32.mrb[17].mxu0 }
 0x129   :  { %v248_v19 = vpop.f32.mrb[18].mxu0 }
 0x12a   :  { %v287_v22 = vpack.c.bf16 %v248_v19, %v244_v62  ;;  %v1317_v25 = vpop.f32.mrb[19].mxu0  ;;  %v1354_v62 = vld [vmem:[%s1589_s1 + $0x20] sm:$0xff]  }
 0x12c   :  { %894 = vmatprep.subr.bf16.mxu1 %v287_v22 }
 0x12d   :  { %895 = vmatpush3.bf16.msra.mxu1 %v287_v22 }
 0x12f   :  { %v254_v28 = vpop.f32.mrb[20].mxu0 }
 0x130   :  { %v1319_v31 = vpop.f32.mrb[21].mxu0 }
 0x131   :  { %v258_v34 = vpop.f32.mrb[22].mxu0 }
 0x132   :  { %v288_v37 = vpack.c.bf16 %v258_v34, %v254_v28  ;;  %v1321_v40 = vpop.f32.mrb[23].mxu0 }
 0x134   :  { %896 = vmatprep.subr.bf16.mxu1 %v288_v37 }
 0x135   :  { %897 = vmatpush3.bf16.msra.mxu1 %v288_v37 }
 0x137   :  { %v264_v41 = vpop.f32.mrb[24].mxu0 }
 0x138   :  { %v1323_v42 = vpop.f32.mrb[25].mxu0 }
 0x139   :  { %v268_v44 = vpop.f32.mrb[26].mxu0 }
 0x13a   :  { %v289_v45 = vpack.c.bf16 %v268_v44, %v264_v41  ;;  %v1325_v47 = vpop.f32.mrb[27].mxu0 }
 0x13c   :  { %898 = vmatprep.subr.bf16.mxu1 %v289_v45 }
 0x13d   :  { %899 = vmatpush3.bf16.msra.mxu1 %v289_v45 }
 0x13f   :  { %v274_v49 = vpop.f32.mrb[28].mxu0 }
 0x140   :  { %v1327_v50 = vpop.f32.mrb[29].mxu0 }
 0x141   :  { %v278_v52 = vpop.f32.mrb[30].mxu0 }
 0x142   :  { %v290_v54 = vpack.c.bf16 %v278_v52, %v274_v49  ;;  %v1329_v55 = vpop.f32.mrb[31].mxu0 }
 0x144   :  { %900 = vmatprep.subr.bf16.mxu1 %v290_v54 }
 0x145   :  { %901 = vmatpush3.bf16.msra.mxu1 %v290_v54 }
 0x146   :  { %514 = vmatprep.subr.bf16.mxu1 %v1148_v1  ;;  %v1365_v1 = vld [vmem:[%s1589_s1 + $0x28] sm:$0xff]  }
 0x148   :  { %903 = vmatmul.mubr.bf16.vlgmr.msra.gmra.mrb[0].mxu1 %v1334_v57 }
 0x149   :  { %906 = vmatprep.mubr.bf16.mxu1 %v1339_v59  ;;  %515 = vmatpush1.bf16.msra.mxu1 %v1153_v2  ;;  %v1370_v2 = vld [vmem:[%s1589_s1 + $0x30] sm:$0xff]  }
 0x14a   :  { %516 = vmatprep.subr.bf16.mxu1 %v1159_v3  ;;  %v1381_v3 = vld [vmem:[%s1589_s1 + $0x38] sm:$0xff]   ;;  %s1103_s1 = smov [#allocation5]  }
 0x14d   :  { %517 = vmatpush1.bf16.msra.mxu1 %v1165_v4 }
 0x14e   :  { %518 = vmatprep.subr.bf16.mxu1 %v1171_v5  ;;  %v1393_v5 = vld [vmem:[%s1591_s3] ss:$0 sm:$0xff]  ;;  %s817_s3 = sshll.u32 %s1103_s1, 4  ;;  %s818_s3 = int_to_ptr.vmem [resolvable:$true] %s817_s3 }
 0x14f   :  { %s1073_s28 = scalar_lea.vmem %s818_s3, 2048  ;;  %p1078_p9 = scmp.lt.s32.totalorder %s818_s3, %s818_s3 }
 0x150   :  { %907 = vmatmul.mubr.bf16.gmra.mrb[4].mxu1 %v1349_v60  ;;  %p1074_p8 = scmp.ne.s32.totalorder %s818_s3, %s1073_s28  ;;  %p1079_p10 = scmp.lt.s32.totalorder %s1073_s28, %s1073_s28 }
 0x151   :  { %910 = vmatprep.mubr.bf16.mxu1 %v1354_v62  ;;  %519 = vmatpush1.bf16.msra.mxu1 %v1177_v6 }
 0x152   :  { %520 = vmatprep.subr.bf16.mxu1 %v1183_v7  ;;  %p1080_p11 = por %p1079_p10, %p1078_p9 }
 0x154   :  { %p1081_p12 = pnand %p1080_p11, %p1074_p8 }
 0x155   :  { %521 = vmatpush1.bf16.msra.mxu1 %v1189_v8 }
 0x156   :  { %522 = vmatprep.subr.bf16.mxu1 %v1195_v9 }
 0x158   :  { %911 = vmatmul.mubr.bf16.gmra.mrb[8].mxu1 %v1365_v1 }
 0x159   :  { %914 = vmatprep.mubr.bf16.mxu1 %v1370_v2  ;;  %523 = vmatpush1.bf16.msra.mxu1 %v1201_v10 }
 0x15a   :  { %524 = vmatprep.subr.bf16.mxu1 %v1206_v11 }
 0x15d   :  { %525 = vmatpush1.bf16.msra.mxu1 %v1212_v12 }
 0x15e   :  { %526 = vmatprep.subr.bf16.mxu1 %v1217_v13 }
 0x160   :  { %915 = vmatmul.mubr.bf16.gmra.mrb[12].mxu1 %v1381_v3 }
 0x161   :  { %527 = vmatpush1.bf16.msra.mxu1 %v1225_v14  ;;  %546 = vmatprep.mubr.bf16.mxu1 %v1102_v0 }
 0x162   :  { %528 = vmatprep.subr.bf16.mxu1 %v1231_v15 }
 0x165   :  { %529 = vmatpush1.bf16.msra.mxu1 %v1237_v16 }
 0x21b   :  { %v904_v4 = vpop.f32.mrb[0].mxu1 }
 0x21c   :  { %v382_v6 = vadd.f32 %v904_v4, %v1303_v48  ;;  %v373_v7 = vpop.f32.mrb[1].mxu1 }
 0x21d   :  { %v374_v8 = vadd.f32 %v373_v7, %v1299_v43  ;;  %v905_v9 = vpop.f32.mrb[2].mxu1 }
 0x21e   :  { %v385_v10 = vadd.f32 %v905_v9, %v1305_v51  ;;  %v376_v11 = vpop.f32.mrb[3].mxu1  ;;  %v444_v16 = vadd.f32 %v1393_v5, %v382_v6 }
 0x21f   :  { %v442_v12 = vadd.f32 %v1393_v5, %v374_v8  ;;  %v377_v13 = vadd.f32 %v376_v11, %v1301_v46 }
 0x220   :  { %v445_v14 = vadd.f32 %v1393_v5, %v385_v10 }
 0x221   :  { %987 = vtanh.f32 %v442_v12  ;;  %v443_v15 = vadd.f32 %v1393_v5, %v377_v13 }
 0x223   :  { %989 = vtanh.f32 %v443_v15  ;;  %v908_v48 = vpop.f32.mrb[4].mxu1 }
 0x224   :  { %v398_v19 = vadd.f32 %v908_v48, %v1311_v58  ;;  %v389_v43 = vpop.f32.mrb[5].mxu1  ;;  %991 = vtanh.f32 %v445_v14 }
 0x225   :  { %v390_v51 = vadd.f32 %v389_v43, %v1307_v53  ;;  %v909_v22 = vpop.f32.mrb[6].mxu1  ;;  %993 = vtanh.f32 %v444_v16 }
 0x226   :  { %v401_v28 = vadd.f32 %v909_v22, %v1313_v61  ;;  %v392_v34 = vpop.f32.mrb[7].mxu1 }
 0x227   :  { %v393_v46 = vadd.f32 %v392_v34, %v1309_v56  ;;  %v446_v44 = vadd.f32 %v1393_v5, %v390_v51 }
 0x228   :  { %v449_v11 = vadd.f32 %v1393_v5, %v401_v28 }
 0x229   :  { %v447_v37 = vadd.f32 %v1393_v5, %v393_v46 }
 0x22b   :  { %v988_v41 = vpop.eup %987  ;;  %v912_v45 = vpop.f32.mrb[8].mxu1  ;;  %995 = vtanh.f32 %v447_v37 }
 0x22c   :  { %v474_v49 = vmul.f32 0.1, %v988_v41  ;;  %v414_v58 = vadd.f32 %v912_v45, %v1319_v31  ;;  %v405_v52 = vpop.f32.mrb[9].mxu1  ;;  %997 = vtanh.f32 %v446_v44 }
 0x22d   :  { %v990_v54 = vpop.eup %989  ;;  %v406_v53 = vadd.f32 %v405_v52, %v1315_v63  ;;  %v913_v4 = vpop.f32.mrb[10].mxu1  ;;  %999 = vtanh.f32 %v449_v11 }
 0x22e   :  { %v475_v61 = vmul.f32 0.1, %v990_v54  ;;  %v417_v6 = vadd.f32 %v913_v4, %v1321_v40  ;;  %v408_v7 = vpop.f32.mrb[11].mxu1  ;;  %v992_v56 = vpop.eup %991  ;;  %v1414_v9 = vadd.f32 %v474_v49, %v1239_v17  ;;  %v448_v40 = vadd.f32 %v1393_v5, %v398_v19 }
 0x22f   :  { %v409_v8 = vadd.f32 %v408_v7, %v1317_v25  ;;  %v994_v31 = vpop.eup %993  ;;  %v477_v12 = vmul.f32 0.1, %v992_v56  ;;  %v452_v49 = vadd.f32 %v1393_v5, %v414_v58 }
 0x230   :  { %v1417_v10 = vadd.f32 %v475_v61, %v1241_v18  ;;  %v476_v14 = vmul.f32 0.1, %v994_v31  ;;  %1001 = vtanh.f32 %v448_v40  ;;  %v453_v41 = vadd.f32 %v1393_v5, %v417_v6 }
 0x231   :  { %v1428_v43 = vadd.f32 %v477_v12, %v1250_v21  ;;  %v451_v28 = vadd.f32 %v1393_v5, %v409_v8 }
 0x232   :  { %v506_v63 = vpack.c.bf16 %v1417_v10, %v1414_v9 }
 0x233   :  { %v916_v13 = vpop.f32.mrb[12].mxu1  ;;  %1003 = vtanh.f32 %v451_v28 }
 0x234   :  { %v430_v15 = vadd.f32 %v916_v13, %v1327_v50  ;;  %v421_v25 = vpop.f32.mrb[13].mxu1  ;;  %547 = vmatmul.mubr.bf16.vlgmr.msra.gmra.mrb[16].mxu1 %v506_v63  ;;  %v1432_v50 = vadd.f32 %v476_v14, %v1248_v20 }
 0x235   :  { %v422_v17 = vadd.f32 %v421_v25, %v1323_v42  ;;  %v917_v18 = vpop.f32.mrb[14].mxu1  ;;  %556 = vmatprep.mubr.bf16.mxu1 %v1102_v0  ;;  %v996_v51 = vpop.eup %995 }
 0x236   :  { %v433_v16 = vadd.f32 %v917_v18, %v1329_v55  ;;  %v424_v48 = vpop.f32.mrb[15].mxu1  ;;  %v998_v22 = vpop.eup %997  ;;  %v479_v42 = vmul.f32 0.1, %v996_v51  ;;  %v507_v34 = vpack.c.bf16 %v1428_v43, %v1432_v50  ;;  %v450_v55 = vadd.f32 %v1393_v5, %v406_v53 }
 0x237   :  { %v425_v19 = vadd.f32 %v424_v48, %v1325_v47  ;;  %v478_v46 = vmul.f32 0.1, %v998_v22  ;;  %v1000_v47 = vpop.eup %999  ;;  %v454_v6 = vadd.f32 %v1393_v5, %v422_v17  ;;  %v456_v63 = vadd.f32 %v1393_v5, %v430_v15 }
 0x238   :  { %v1440_v21 = vadd.f32 %v479_v42, %v1257_v24  ;;  %1005 = vtanh.f32 %v450_v55  ;;  %v481_v44 = vmul.f32 0.1, %v1000_v47  ;;  %v457_v31 = vadd.f32 %v1393_v5, %v433_v16 }
 0x239   :  { %v1443_v20 = vadd.f32 %v478_v46, %v1255_v23  ;;  %1007 = vtanh.f32 %v453_v41  ;;  %v455_v4 = vadd.f32 %v1393_v5, %v425_v19 }
 0x23a   :  { %v1002_v37 = vpop.eup %1001  ;;  %v1451_v24 = vadd.f32 %v481_v44, %v1264_v27  ;;  %1009 = vtanh.f32 %v452_v49 }
 0x23b   :  { %v508_v45 = vpack.c.bf16 %v1440_v21, %v1443_v20  ;;  %v480_v52 = vmul.f32 0.1, %v1002_v37  ;;  %1011 = vtanh.f32 %v455_v4 }
 0x23c   :  { %557 = vmatmul.mubr.bf16.gmra.mrb[20].mxu1 %v507_v34  ;;  %1013 = vtanh.f32 %v454_v6 }
 0x23d   :  { %566 = vmatprep.mubr.bf16.mxu1 %v1102_v0  ;;  %v1004_v54 = vpop.eup %1003  ;;  %v1454_v23 = vadd.f32 %v480_v52, %v1262_v26  ;;  %1015 = vtanh.f32 %v457_v31 }
 0x23e   :  { %v483_v61 = vmul.f32 0.1, %v1004_v54  ;;  %1017 = vtanh.f32 %v456_v63 }
 0x23f   :  { %v509_v58 = vpack.c.bf16 %v1451_v24, %v1454_v23 }
 0x240   :  { %v1462_v27 = vadd.f32 %v483_v61, %v1271_v30 }
 0x242   :  { %v1006_v53 = vpop.eup %1005 }
 0x243   :  { %v482_v7 = vmul.f32 0.1, %v1006_v53  ;;  %v1008_v56 = vpop.eup %1007 }
 0x244   :  { %567 = vmatmul.mubr.bf16.gmra.mrb[24].mxu1 %v508_v45  ;;  %v1010_v8 = vpop.eup %1009  ;;  %v485_v11 = vmul.f32 0.1, %v1008_v56 }
 0x245   :  { %576 = vmatprep.mubr.bf16.mxu1 %v1102_v0  ;;  %v1465_v26 = vadd.f32 %v482_v7, %v1269_v29  ;;  %v484_v40 = vmul.f32 0.1, %v1010_v8  ;;  %v1012_v13 = vpop.eup %1011 }
 0x246   :  { %v1473_v30 = vadd.f32 %v485_v11, %v1278_v33  ;;  %v1014_v14 = vpop.eup %1013  ;;  %v487_v25 = vmul.f32 0.1, %v1012_v13 }
 0x247   :  { %v510_v12 = vpack.c.bf16 %v1462_v27, %v1465_v26  ;;  %v1476_v29 = vadd.f32 %v484_v40, %v1276_v32  ;;  %v486_v18 = vmul.f32 0.1, %v1014_v14  ;;  %v1016_v16 = vpop.eup %1015 }
 0x248   :  { %v1482_v15 = vadd.f32 %v487_v25, %v1285_v36  ;;  %v1018_v48 = vpop.eup %1017  ;;  %v489_v51 = vmul.f32 0.1, %v1016_v16 }
 0x249   :  { %v511_v17 = vpack.c.bf16 %v1473_v30, %v1476_v29  ;;  %v1485_v33 = vadd.f32 %v486_v18, %v1283_v35  ;;  %v488_v19 = vmul.f32 0.1, %v1018_v48 }
 0x24a   :  { %v1491_v22 = vadd.f32 %v489_v51, %v1292_v39 }
 0x24b   :  { %v512_v32 = vpack.c.bf16 %v1482_v15, %v1485_v33  ;;  %v1494_v28 = vadd.f32 %v488_v19, %v1290_v38 }
 0x24c   :  { %577 = vmatmul.mubr.bf16.gmra.mrb[28].mxu1 %v509_v58 }
 0x24d   :  { %586 = vmatprep.mubr.bf16.mxu1 %v1102_v0  ;;  %v513_v36 = vpack.c.bf16 %v1491_v22, %v1494_v28 }
 0x254   :  { %587 = vmatmul.mubr.bf16.gmra.mrb[32].mxu1 %v510_v12 }
 0x255   :  { %596 = vmatprep.mubr.bf16.mxu1 %v1102_v0 }
 0x25c   :  { %597 = vmatmul.mubr.bf16.gmra.mrb[36].mxu1 %v511_v17 }
 0x25d   :  { %606 = vmatprep.mubr.bf16.mxu1 %v1102_v0 }
 0x264   :  { %607 = vmatmul.mubr.bf16.gmra.mrb[40].mxu1 %v512_v32 }
 0x265   :  { %616 = vmatprep.mubr.bf16.mxu1 %v1102_v0 }
 0x26c   :  { %617 = vmatmul.mubr.bf16.gmra.mrb[44].mxu1 %v513_v36 }
 0x307   :  { %v548_v35 = vpop.f32.mrb[16].mxu1 }
 0x308   :  { %v1498_v42 = vpop.f32.mrb[17].mxu1 }
 0x309   :  { %v552_v34 = vpop.f32.mrb[18].mxu1 }
 0x30a   :  { %v627_v55 = vpack.c.bf16 %v552_v34, %v548_v35  ;;  %v1500_v46 = vpop.f32.mrb[19].mxu1 }
 0x30c   :  { %918 = vmatprep.subr.bf16.mxu0 %v627_v55 }
 0x30d   :  { %919 = vmatpush3.bf16.msra.mxu0 %v627_v55 }
 0x30f   :  { %v558_v0 = vpop.f32.mrb[20].mxu1 }
 0x310   :  { %v560_v47 = vpop.f32.mrb[21].mxu1 }
 0x311   :  { %v562_v39 = vpop.f32.mrb[22].mxu1 }
 0x312   :  { %v628_v37 = vpack.c.bf16 %v562_v39, %v558_v0  ;;  %v564_v41 = vpop.f32.mrb[23].mxu1 }
 0x314   :  { %920 = vmatprep.subr.bf16.mxu0 %v628_v37 }
 0x315   :  { %921 = vmatpush3.bf16.msra.mxu0 %v628_v37 }
 0x317   :  { %v568_v38 = vpop.f32.mrb[24].mxu1 }
 0x318   :  { %v1502_v44 = vpop.f32.mrb[25].mxu1 }
 0x319   :  { %v572_v45 = vpop.f32.mrb[26].mxu1 }
 0x31a   :  { %v629_v49 = vpack.c.bf16 %v572_v45, %v568_v38  ;;  %v1504_v52 = vpop.f32.mrb[27].mxu1 }
 0x31c   :  { %922 = vmatprep.subr.bf16.mxu0 %v629_v49 }
 0x31d   :  { %923 = vmatpush3.bf16.msra.mxu0 %v629_v49 }
 0x31f   :  { %v578_v54 = vpop.f32.mrb[28].mxu1 }
 0x320   :  { %v580_v53 = vpop.f32.mrb[29].mxu1 }
 0x321   :  { %v582_v4 = vpop.f32.mrb[30].mxu1 }
 0x322   :  { %v630_v61 = vpack.c.bf16 %v582_v4, %v578_v54  ;;  %v584_v58 = vpop.f32.mrb[31].mxu1 }
 0x324   :  { %924 = vmatprep.subr.bf16.mxu0 %v630_v61 }
 0x325   :  { %925 = vmatpush3.bf16.msra.mxu0 %v630_v61 }
 0x327   :  { %v588_v6 = vpop.f32.mrb[32].mxu1 }
 0x328   :  { %v1506_v7 = vpop.f32.mrb[33].mxu1 }
 0x329   :  { %v592_v56 = vpop.f32.mrb[34].mxu1 }
 0x32a   :  { %v631_v8 = vpack.c.bf16 %v592_v56, %v588_v6  ;;  %v1508_v31 = vpop.f32.mrb[35].mxu1 }
 0x32c   :  { %926 = vmatprep.subr.bf16.mxu0 %v631_v8 }
 0x32d   :  { %927 = vmatpush3.bf16.msra.mxu0 %v631_v8 }
 0x32f   :  { %v598_v11 = vpop.f32.mrb[36].mxu1 }
 0x330   :  { %v1510_v12 = vpop.f32.mrb[37].mxu1 }
 0x331   :  { %v602_v63 = vpop.f32.mrb[38].mxu1 }
 0x332   :  { %v632_v40 = vpack.c.bf16 %v602_v63, %v598_v11  ;;  %v1512_v13 = vpop.f32.mrb[39].mxu1 }
 0x334   :  { %928 = vmatprep.subr.bf16.mxu0 %v632_v40 }
 0x335   :  { %929 = vmatpush3.bf16.msra.mxu0 %v632_v40 }
 0x337   :  { %v608_v14 = vpop.f32.mrb[40].mxu1 }
 0x338   :  { %v1514_v25 = vpop.f32.mrb[41].mxu1 }
 0x339   :  { %v612_v17 = vpop.f32.mrb[42].mxu1 }
 0x33a   :  { %v633_v18 = vpack.c.bf16 %v612_v17, %v608_v14  ;;  %v1516_v16 = vpop.f32.mrb[43].mxu1 }
 0x33c   :  { %930 = vmatprep.subr.bf16.mxu0 %v633_v18 }
 0x33d   :  { %931 = vmatpush3.bf16.msra.mxu0 %v633_v18 }
 0x33f   :  { %v618_v48 = vpop.f32.mrb[44].mxu1 }
 0x340   :  { %v1518_v51 = vpop.f32.mrb[45].mxu1 }
 0x341   :  { %v622_v32 = vpop.f32.mrb[46].mxu1 }
 0x342   :  { %v634_v19 = vpack.c.bf16 %v622_v32, %v618_v48  ;;  %v1520_v36 = vpop.f32.mrb[47].mxu1 }
 0x344   :  { %932 = vmatprep.subr.bf16.mxu0 %v634_v19 }
 0x345   :  { %933 = vmatpush3.bf16.msra.mxu0 %v634_v19 }
 0x348   :  { %935 = vmatmul.mubr.bf16.vlgmr.msra.gmra.mrb[32].mxu0 %v1334_v57 }
 0x349   :  { %938 = vmatprep.mubr.bf16.mxu0 %v1339_v59 }
 0x350   :  { %939 = vmatmul.mubr.bf16.gmra.mrb[36].mxu0 %v1349_v60 }
 0x351   :  { %942 = vmatprep.mubr.bf16.mxu0 %v1354_v62 }
 0x358   :  { %943 = vmatmul.mubr.bf16.gmra.mrb[40].mxu0 %v1365_v1 }
 0x359   :  { %946 = vmatprep.mubr.bf16.mxu0 %v1370_v2 }
 0x360   :  { %947 = vmatmul.mubr.bf16.gmra.mrb[44].mxu0 %v1381_v3 }
 0x41b   :  { %v936_v35 = vpop.f32.mrb[32].mxu0 }
 0x41c   :  { %v678_v34 = vadd.f32 %v936_v35, %v560_v47  ;;  %v669_v55 = vpop.f32.mrb[33].mxu0 }
 0x41d   :  { %v670_v0 = vadd.f32 %v669_v55, %v1498_v42  ;;  %v937_v39 = vpop.f32.mrb[34].mxu0 }
 0x41e   :  { %v734_v57 = vadd.f32 %v1393_v5, %v678_v34  ;;  %v681_v37 = vadd.f32 %v937_v39, %v564_v41  ;;  %v672_v59 = vpop.f32.mrb[35].mxu0 }
 0x41f   :  { %v732_v60 = vadd.f32 %v1393_v5, %v670_v0  ;;  %v673_v62 = vadd.f32 %v672_v59, %v1500_v46 }
 0x420   :  { %1019 = vtanh.f32 %v734_v57  ;;  %v735_v1 = vadd.f32 %v1393_v5, %v681_v37 }
 0x421   :  { %1021 = vtanh.f32 %v732_v60  ;;  %v733_v2 = vadd.f32 %v1393_v5, %v673_v62 }
 0x422   :  { %1023 = vtanh.f32 %v735_v1 }
 0x423   :  { %1025 = vtanh.f32 %v733_v2  ;;  %v940_v3 = vpop.f32.mrb[36].mxu0 }
 0x424   :  { %v694_v47 = vadd.f32 %v940_v3, %v580_v53  ;;  %v685_v42 = vpop.f32.mrb[37].mxu0 }
 0x425   :  { %v686_v38 = vadd.f32 %v685_v42, %v1502_v44  ;;  %v941_v45 = vpop.f32.mrb[38].mxu0 }
 0x426   :  { %v738_v41 = vadd.f32 %v1393_v5, %v694_v47  ;;  %v697_v49 = vadd.f32 %v941_v45, %v584_v58  ;;  %v688_v54 = vpop.f32.mrb[39].mxu0 }
 0x427   :  { %v736_v46 = vadd.f32 %v1393_v5, %v686_v38  ;;  %v689_v4 = vadd.f32 %v688_v54, %v1504_v52 }
 0x428   :  { %1027 = vtanh.f32 %v738_v41  ;;  %v739_v61 = vadd.f32 %v1393_v5, %v697_v49 }
 0x429   :  { %1029 = vtanh.f32 %v736_v46  ;;  %v737_v6 = vadd.f32 %v1393_v5, %v689_v4 }
 0x42a   :  { %v1020_v56 = vpop.eup %1019  ;;  %1031 = vtanh.f32 %v739_v61 }
 0x42b   :  { %v1022_v53 = vpop.eup %1021  ;;  %v766_v8 = vmul.f32 0.1, %v1020_v56  ;;  %1033 = vtanh.f32 %v737_v6  ;;  %v944_v44 = vpop.f32.mrb[40].mxu0 }
 0x42c   :  { %v1024_v11 = vpop.eup %1023  ;;  %v764_v63 = vmul.f32 0.1, %v1022_v53  ;;  %v710_v58 = vadd.f32 %v944_v44, %v1510_v12  ;;  %v701_v40 = vpop.f32.mrb[41].mxu0 }
 0x42d   :  { %v1026_v14 = vpop.eup %1025  ;;  %v782_v52 = vadd.f32 %v766_v8, %v1432_v50  ;;  %v767_v17 = vmul.f32 0.1, %v1024_v11  ;;  %v702_v18 = vadd.f32 %v701_v40, %v1506_v7  ;;  %v945_v48 = vpop.f32.mrb[42].mxu0 }
 0x42e   :  { %v780_v32 = vadd.f32 %v764_v63, %v1414_v9  ;;  %v765_v19 = vmul.f32 0.1, %v1026_v14  ;;  %v742_v35 = vadd.f32 %v1393_v5, %v710_v58  ;;  %v713_v34 = vadd.f32 %v945_v48, %v1512_v13  ;;  %v704_v55 = vpop.f32.mrb[43].mxu0 }
 0x42f   :  { %798 = vst [vmem:[#allocation5 + $0x10] sm:$0xff] %v782_v52  ;;  %v783_v0 = vadd.f32 %v767_v17, %v1428_v43  ;;  %v740_v12 = vadd.f32 %v1393_v5, %v702_v18  ;;  %v705_v39 = vadd.f32 %v704_v55, %v1508_v31 }
 0x430   :  { %796 = vst [vmem:[#allocation5] sm:$0xff] %v780_v32  ;;  %v781_v50 = vadd.f32 %v765_v19, %v1417_v10  ;;  %1035 = vtanh.f32 %v742_v35  ;;  %v743_v7 = vadd.f32 %v1393_v5, %v713_v34 }
 0x431   :  { %799 = vst [vmem:[#allocation5 + $0x18] sm:$0xff] %v783_v0  ;;  %1037 = vtanh.f32 %v740_v12  ;;  %v741_v9 = vadd.f32 %v1393_v5, %v705_v39 }
 0x432   :  { %v1028_v57 = vpop.eup %1027  ;;  %797 = vst [vmem:[#allocation5 + $0x8] sm:$0xff] %v781_v50  ;;  %1039 = vtanh.f32 %v743_v7 }
 0x433   :  { %v1030_v13 = vpop.eup %1029  ;;  %v770_v37 = vmul.f32 0.1, %v1028_v57  ;;  %1041 = vtanh.f32 %v741_v9  ;;  %v948_v43 = vpop.f32.mrb[44].mxu0 }
 0x434   :  { %v1032_v59 = vpop.eup %1031  ;;  %v768_v60 = vmul.f32 0.1, %v1030_v13  ;;  %v726_v31 = vadd.f32 %v948_v43, %v1518_v51  ;;  %v717_v62 = vpop.f32.mrb[45].mxu0 }
 0x435   :  { %v1034_v10 = vpop.eup %1033  ;;  %v786_v1 = vadd.f32 %v770_v37, %v1454_v23  ;;  %v771_v2 = vmul.f32 0.1, %v1032_v59  ;;  %v718_v3 = vadd.f32 %v717_v62, %v1514_v25  ;;  %v949_v47 = vpop.f32.mrb[46].mxu0 }
 0x436   :  { %v784_v42 = vadd.f32 %v768_v60, %v1443_v20  ;;  %v769_v38 = vmul.f32 0.1, %v1034_v10  ;;  %v746_v45 = vadd.f32 %v1393_v5, %v726_v31  ;;  %v729_v41 = vadd.f32 %v949_v47, %v1520_v36  ;;  %v720_v49 = vpop.f32.mrb[47].mxu0 }
 0x437   :  { %802 = vst [vmem:[#allocation5 + $0x30] sm:$0xff] %v786_v1  ;;  %v787_v54 = vadd.f32 %v771_v2, %v1451_v24  ;;  %v744_v51 = vadd.f32 %v1393_v5, %v718_v3  ;;  %v721_v46 = vadd.f32 %v720_v49, %v1516_v16 }
 0x438   :  { %800 = vst [vmem:[#allocation5 + $0x20] sm:$0xff] %v784_v42  ;;  %v785_v23 = vadd.f32 %v769_v38, %v1440_v21  ;;  %1043 = vtanh.f32 %v746_v45  ;;  %v747_v25 = vadd.f32 %v1393_v5, %v729_v41 }
 0x439   :  { %803 = vst [vmem:[#allocation5 + $0x38] sm:$0xff] %v787_v54  ;;  %1045 = vtanh.f32 %v744_v51  ;;  %v745_v20 = vadd.f32 %v1393_v5, %v721_v46 }
 0x43a   :  { %v1036_v4 = vpop.eup %1035  ;;  %801 = vst [vmem:[#allocation5 + $0x28] sm:$0xff] %v785_v23  ;;  %1047 = vtanh.f32 %v747_v25 }
 0x43b   :  { %v1038_v36 = vpop.eup %1037  ;;  %v774_v61 = vmul.f32 0.1, %v1036_v4  ;;  %1049 = vtanh.f32 %v745_v20 }
 0x43c   :  { %v1040_v24 = vpop.eup %1039  ;;  %v772_v6 = vmul.f32 0.1, %v1038_v36 }
 0x43d   :  { %v1042_v56 = vpop.eup %1041  ;;  %v790_v16 = vadd.f32 %v774_v61, %v1476_v29  ;;  %v775_v53 = vmul.f32 0.1, %v1040_v24 }
 0x43e   :  { %v788_v21 = vadd.f32 %v772_v6, %v1465_v26  ;;  %v773_v8 = vmul.f32 0.1, %v1042_v56 }
 0x43f   :  { %806 = vst [vmem:[#allocation5 + $0x50] sm:$0xff] %v790_v16  ;;  %v791_v44 = vadd.f32 %v775_v53, %v1473_v30 }
 0x440   :  { %804 = vst [vmem:[#allocation5 + $0x40] sm:$0xff] %v788_v21  ;;  %v789_v5 = vadd.f32 %v773_v8, %v1462_v27 }
 0x441   :  { %807 = vst [vmem:[#allocation5 + $0x58] sm:$0xff] %v791_v44 }
 0x442   :  { %v1044_v11 = vpop.eup %1043  ;;  %805 = vst [vmem:[#allocation5 + $0x48] sm:$0xff] %v789_v5 }
 0x443   :  { %v1046_v63 = vpop.eup %1045  ;;  %v778_v58 = vmul.f32 0.1, %v1044_v11 }
 0x444   :  { %v1048_v40 = vpop.eup %1047  ;;  %v776_v14 = vmul.f32 0.1, %v1046_v63 }
 0x445   :  { %v1050_v52 = vpop.eup %1049  ;;  %v794_v29 = vadd.f32 %v778_v58, %v1494_v28  ;;  %v779_v17 = vmul.f32 0.1, %v1048_v40 }
 0x446   :  { %v792_v26 = vadd.f32 %v776_v14, %v1485_v33  ;;  %v777_v18 = vmul.f32 0.1, %v1050_v52 }
 0x447   :  { %810 = vst [vmem:[#allocation5 + $0x70] sm:$0xff] %v794_v29  ;;  %v795_v30 = vadd.f32 %v779_v17, %v1491_v22 }
 0x448   :  { %808 = vst [vmem:[#allocation5 + $0x60] sm:$0xff] %v792_v26  ;;  %v793_v27 = vadd.f32 %v777_v18, %v1482_v15 }
 0x449   :  { %811 = vst [vmem:[#allocation5 + $0x78] sm:$0xff] %v795_v30 }
 0x44a   :  { %809 = vst [vmem:[#allocation5 + $0x68] sm:$0xff] %v793_v27 }
 0x44b   :  { %1084 = shalt.err (!%p1081_p12)
}
 0x44c   :  { %s1085_s5 = scalar_lea.hbm %s1592_s4, 2048 }
 0x44d   :  { %p1086_p13 = scmp.ne.s32.totalorder %s1592_s4, %s1085_s5  ;;  %p1089_p0 = scmp.lt.u32.totalorder %s1085_s5, %s1592_s4 }
 0x44f   :  { %p1091_p1 = pnand %p1089_p0, %p1086_p13 }
 0x451   :  { %1094 = shalt.err (!%p1091_p1)
}
 0x452   :  { %823 = dma.vmem_to_hbm [thread:$0]  %s818_s3, 2048, %s1592_s4, [#allocation4], %s1100_s25, %s1100_s25, %s1101_s26  }
 0x453   :  { %1097 = dma.done.wait [#allocation4], 2048  }
 0x454   :  { %1098 = vsyncadd [#allocation4], 4294965248 }
 0x455   :  { %827 = vsyncpa [#allocation3], 1 }
 0x456   :  { %828 = vsyncpa [#allocation4], 1 }

</bundles_post_ra>
